<compile_context>
chip_gen: v5e
topology: v5e:2x2
jax: 0.10.0
libtpu: 0.0.40
codegen_flags: <defaults>
</compile_context>

<pallas_src>
import jax
import jax.numpy as jnp
from jax.experimental import pallas as pl
from jax.experimental.pallas import tpu as pltpu

LANE = 128        # TPU lane width (last-dim vreg tile)
NEG_BIG = -1e30   # finite "-inf" for padded class lanes


def _round_up(x, m):
    return m * pl.cdiv(x, m)


def _bnn_forward_kernel(x_ref, w1_ref, b1_ref, w2_ref, b2_ref, w3_ref, b3_ref, o_ref):
    """One batch tile of the BNN forward.

    x_ref : (TB, dim_in)  f32  (cast to bf16 here, on the VPU)
    w*_ref: pre-transposed, lane-padded weights [d_in_layer, d_out_layer], bf16
    b*_ref: biases [1, d_out_layer], f32 (b3's padded lanes hold -1e30)
    o_ref : (TB, num_classes) f32 log-probs
    """
    x = x_ref[...].astype(w1_ref.dtype)   # f32 -> bf16, hidden under the matmuls

    # Layer 1: bf16 MXU matmul, f32 accumulate, f32 bias + ReLU.
    h1 = jnp.dot(x, w1_ref[...], preferred_element_type=jnp.float32) + b1_ref[...]
    h1 = jnp.maximum(h1, 0.0)

    # Layer 2.
    h2 = jnp.dot(h1.astype(w2_ref.dtype), w2_ref[...],
                 preferred_element_type=jnp.float32) + b2_ref[...]
    h2 = jnp.maximum(h2, 0.0)

    # Layer 3. Padded class lanes already sit at ~-1e30 via the b3 padding,
    # so they contribute exp(...) == 0 to the softmax denominator.
    logits = jnp.dot(h2.astype(w3_ref.dtype), w3_ref[...],
                     preferred_element_type=jnp.float32) + b3_ref[...]

    m = jnp.max(logits, axis=1, keepdims=True)
    z = logits - m
    lse = jnp.log(jnp.sum(jnp.exp(z), axis=1, keepdims=True))
    logp = z - lse

    nc = o_ref.shape[-1]
    o_ref[...] = logp[:, :nc].astype(o_ref.dtype)


def pack_params(params):
    """One-time repack of the mu parameters for the kernel (call once at init).

    Returns dict with:
      w1 : bf16 [dim_in, hid_pad]      (transposed, hidden axis zero-padded to 128-mult)
      w2 : bf16 [hid_pad, hid_pad]
      w3 : bf16 [hid_pad, dout_pad]    (class axis padded to 128-mult)
      b1, b2 : f32 [1, hid_pad]        (zero-padded)
      b3 : f32 [1, dout_pad]           (padded class lanes filled with -1e30)
    dim_in is intentionally NOT padded (it would inflate the x HBM read).
    """
    dim_hid, dim_in = params["w1"].shape
    dim_out = params["w3"].shape[0]
    hid_pad = _round_up(dim_hid, LANE)
    dout_pad = _round_up(dim_out, LANE)

    w1 = jnp.zeros((dim_in, hid_pad), jnp.float32).at[:, :dim_hid].set(params["w1"].T)
    b1 = jnp.zeros((1, hid_pad), jnp.float32).at[0, :dim_hid].set(params["b1"])
    w2 = jnp.zeros((hid_pad, hid_pad), jnp.float32).at[:dim_hid, :dim_hid].set(params["w2"].T)
    b2 = jnp.zeros((1, hid_pad), jnp.float32).at[0, :dim_hid].set(params["b2"])
    w3 = jnp.zeros((hid_pad, dout_pad), jnp.float32).at[:dim_hid, :dim_out].set(params["w3"].T)
    b3 = jnp.full((1, dout_pad), NEG_BIG, jnp.float32).at[0, :dim_out].set(params["b3"])

    return {
        "w1": w1.astype(jnp.bfloat16), "b1": b1,
        "w2": w2.astype(jnp.bfloat16), "b2": b2,
        "w3": w3.astype(jnp.bfloat16), "b3": b3,
    }


def _pick_batch_tile(batch, batch_tile):
    if batch < 8:
        return batch                      # block second-to-last dim == full dim
    tb = min(batch_tile, _round_up(batch, 8))
    if batch > 256:
        # Ensure >= 2 grid steps so v7x's second TensorCore gets work; keep the
        # tile a 256-multiple so the M axis feeds the 2x256^2 MXU cleanly.
        tb = min(tb, _round_up(pl.cdiv(batch, 2), 256))
    return tb


def _vmem_limit_bytes(tb, dim_in, hid_pad, dout_pad, num_classes):
    x_blk = tb * dim_in * 4
    out_blk = tb * num_classes * 4
    w_bytes = (dim_in * hid_pad + hid_pad * hid_pad + hid_pad * dout_pad) * 2
    b_bytes = (2 * hid_pad + dout_pad) * 4
    act_bytes = tb * (2 * hid_pad + dout_pad) * 4        # h1/h2/logits live in VMEM/vregs
    need = 2 * (x_blk + out_blk + w_bytes + b_bytes) + act_bytes + (8 << 20)
    return int(min(max(need, 32 << 20), 128 << 20))


def bayesian_nn_forward(x, packed, num_classes, *, batch_tile=512):
    """x: [batch, dim_in] f32. packed: output of pack_params.
    Returns [batch, num_classes] f32 log-probabilities."""
    if x.dtype != jnp.float32:
        x = x.astype(jnp.float32)
    batch, dim_in = x.shape
    hid_pad = packed["w1"].shape[1]
    dout_pad = packed["w3"].shape[1]

    tb = _pick_batch_tile(batch, batch_tile)
    grid = (pl.cdiv(batch, tb),)

    flops = 2 * batch * (dim_in * hid_pad + hid_pad * hid_pad + hid_pad * dout_pad)
    bytes_accessed = (
        batch * dim_in * 4                                               # x (f32)
        + (dim_in * hid_pad + hid_pad * hid_pad + hid_pad * dout_pad) * 2  # weights (bf16)
        + (2 * hid_pad + dout_pad) * 4                                   # biases (f32)
        + batch * num_classes * 4                                        # out (f32)
    )
    cost = pl.CostEstimate(flops=flops,
                           transcendentals=batch * dout_pad,
                           bytes_accessed=bytes_accessed)

    out = pl.pallas_call(
        _bnn_forward_kernel,
        out_shape=jax.ShapeDtypeStruct((batch, num_classes), jnp.float32),
        grid=grid,
        in_specs=[
            pl.BlockSpec((tb, dim_in), lambda i: (i, 0)),         # x: tiled over batch
            pl.BlockSpec((dim_in, hid_pad), lambda i: (0, 0)),    # w1: resident
            pl.BlockSpec((1, hid_pad), lambda i: (0, 0)),         # b1
            pl.BlockSpec((hid_pad, hid_pad), lambda i: (0, 0)),   # w2
            pl.BlockSpec((1, hid_pad), lambda i: (0, 0)),         # b2
            pl.BlockSpec((hid_pad, dout_pad), lambda i: (0, 0)),  # w3 (lane-padded)
            pl.BlockSpec((1, dout_pad), lambda i: (0, 0)),        # b3 (padded with -1e30)
        ],
        out_specs=pl.BlockSpec((tb, num_classes), lambda i: (i, 0)),
        compiler_params=pltpu.CompilerParams(
            dimension_semantics=("parallel",),
            vmem_limit_bytes=_vmem_limit_bytes(tb, dim_in, hid_pad, dout_pad, num_classes),
        ),
        cost_estimate=cost,
    )(x, packed["w1"], packed["b1"], packed["w2"], packed["b2"],
      packed["w3"], packed["b3"])

    return out


def init_params(key, dim_in, dim_hid, dim_out):
    """Deterministic init mirroring BayesianLinear's mu init:
       mu ~ Uniform(-0.2, 0.2). Only mu is used in eval forward (sample=False)."""
    ks = jax.random.split(key, 6)

    def u(k, shape):
        return jax.random.uniform(k, shape, jnp.float32, minval=-0.2, maxval=0.2)

    return {
        "w1": u(ks[0], (dim_hid, dim_in)),
        "b1": u(ks[1], (dim_hid,)),
        "w2": u(ks[2], (dim_hid, dim_hid)),
        "b2": u(ks[3], (dim_hid,)),
        "w3": u(ks[4], (dim_out, dim_hid)),
        "b3": u(ks[5], (dim_out,)),
    }


def reference_forward_f32(x, params):
    """Pure-f32 JAX reference of the PyTorch forward (eval mode)."""
    h1 = jnp.maximum(x @ params["w1"].T + params["b1"], 0.0)
    h2 = jnp.maximum(h1 @ params["w2"].T + params["b2"], 0.0)
    logits = h2 @ params["w3"].T + params["b3"]
    return jax.nn.log_softmax(logits, axis=1)


def reference_forward_kernel_math(x, packed, num_classes):
    """Pure-JAX mirror of the exact kernel math (bf16 MXU operands, f32 accumulate,
    padded hidden/class axes, -1e30 padded class bias)."""
    bf16 = jnp.bfloat16
    h1 = jnp.maximum(
        jnp.dot(x.astype(bf16), packed["w1"], preferred_element_type=jnp.float32)
        + packed["b1"], 0.0)
    h2 = jnp.maximum(
        jnp.dot(h1.astype(bf16), packed["w2"], preferred_element_type=jnp.float32)
        + packed["b2"], 0.0)
    logits = (jnp.dot(h2.astype(bf16), packed["w3"], preferred_element_type=jnp.float32)
              + packed["b3"])
    return jax.nn.log_softmax(logits, axis=1)[:, :num_classes]


if __name__ == "__main__":
    key = jax.random.PRNGKey(0)
    k_x, k_p = jax.random.split(key)

    batch, dim_in, dim_hid, dim_out = 8, 32, 32, 16
    x = jax.random.normal(k_x, (batch, dim_in), dtype=jnp.float32)
    params = init_params(k_p, dim_in, dim_hid, dim_out)
    packed = pack_params(params)   # one-time repack (transpose/pad/cast), off the hot path

    out = bayesian_nn_forward(x, packed, dim_out)
    out = jax.block_until_ready(out)
    assert out.shape == (batch, dim_out)
    assert bool(jnp.all(jnp.isfinite(out)))

    # Tight check against an exact mirror of the kernel math (bf16 operands, f32 acc).
    ref_exact = reference_forward_kernel_math(x, packed, dim_out)
    assert jnp.allclose(out, ref_exact, atol=1e-4, rtol=1e-4), "mismatch vs bf16-math reference"

    # Looser check against the full-f32 PyTorch-equivalent reference.
    ref_f32 = reference_forward_f32(x, params)
    assert jnp.allclose(out, ref_f32, atol=5e-2, rtol=5e-2), "mismatch vs f32 reference"

    # log_softmax rows should exp-sum to 1.
    assert jnp.allclose(jnp.sum(jnp.exp(out), axis=1), 1.0, atol=1e-4)

    print("KERNEL_OK")
</pallas_src>

<mosaic_0001>
module attributes {stable_mosaic.version = 11 : i64} {
  func.func @_bnn_forward_kernel(%arg0: i32, %arg1: memref<8x32xf32, #tpu.memory_space<vmem>>, %arg2: memref<32x128xbf16, #tpu.memory_space<vmem>>, %arg3: memref<1x128xf32, #tpu.memory_space<vmem>>, %arg4: memref<128x128xbf16, #tpu.memory_space<vmem>>, %arg5: memref<1x128xf32, #tpu.memory_space<vmem>>, %arg6: memref<128x128xbf16, #tpu.memory_space<vmem>>, %arg7: memref<1x128xf32, #tpu.memory_space<vmem>>, %arg8: memref<8x16xf32, #tpu.memory_space<vmem>>) attributes {dimension_semantics = [#tpu.dimension_semantics<parallel>], iteration_bounds = array<i64: 1>, scalar_prefetch = 0 : i64, scratch_operands = 0 : i64, tpu.core_type = #tpu.core_type<tc>, window_params = [{transform_indices = @transform_0, window_bounds = array<i64: 8, 32>}, {pipeline_mode = #tpu.pipeline_mode<synchronous>, transform_indices = @transform_1, window_bounds = array<i64: 32, 128>}, {pipeline_mode = #tpu.pipeline_mode<synchronous>, transform_indices = @transform_2, window_bounds = array<i64: 1, 128>}, {pipeline_mode = #tpu.pipeline_mode<synchronous>, transform_indices = @transform_3, window_bounds = array<i64: 128, 128>}, {pipeline_mode = #tpu.pipeline_mode<synchronous>, transform_indices = @transform_4, window_bounds = array<i64: 1, 128>}, {pipeline_mode = #tpu.pipeline_mode<synchronous>, transform_indices = @transform_5, window_bounds = array<i64: 128, 128>}, {pipeline_mode = #tpu.pipeline_mode<synchronous>, transform_indices = @transform_6, window_bounds = array<i64: 1, 128>}, {transform_indices = @transform_7, window_bounds = array<i64: 8, 16>}]} {
    %c0 = arith.constant 0 : index
    %c0_0 = arith.constant 0 : index
    %0 = vector.load %arg1[%c0, %c0_0] : memref<8x32xf32, #tpu.memory_space<vmem>>, vector<8x32xf32>
    %1 = arith.truncf %0 : vector<8x32xf32> to vector<8x32xbf16>
    %c0_1 = arith.constant 0 : index
    %c0_2 = arith.constant 0 : index
    %2 = vector.load %arg2[%c0_1, %c0_2] : memref<32x128xbf16, #tpu.memory_space<vmem>>, vector<32x128xbf16>
    %cst = arith.constant dense<0.000000e+00> : vector<8x128xf32>
    %3 = tpu.matmul %1, %2, %cst {dimension_numbers = #tpu.dot_dimension_numbers<[1], [0], [0], [1], [0, 0, 1, 1], [], []>} : vector<8x32xbf16>, vector<32x128xbf16>, vector<8x128xf32> -> vector<8x128xf32>
    %c0_3 = arith.constant 0 : index
    %c0_4 = arith.constant 0 : index
    %4 = vector.load %arg3[%c0_3, %c0_4] : memref<1x128xf32, #tpu.memory_space<vmem>>, vector<1x128xf32>
    %5 = vector.broadcast %4 : vector<1x128xf32> to vector<8x128xf32>
    %6 = arith.addf %3, %5 : vector<8x128xf32>
    %cst_5 = arith.constant 0.000000e+00 : f32
    %7 = vector.broadcast %cst_5 : f32 to vector<8x128xf32>
    %8 = arith.maximumf %6, %7 : vector<8x128xf32>
    %9 = arith.truncf %8 : vector<8x128xf32> to vector<8x128xbf16>
    %c0_6 = arith.constant 0 : index
    %c0_7 = arith.constant 0 : index
    %10 = vector.load %arg4[%c0_6, %c0_7] : memref<128x128xbf16, #tpu.memory_space<vmem>>, vector<128x128xbf16>
    %cst_8 = arith.constant dense<0.000000e+00> : vector<8x128xf32>
    %11 = tpu.matmul %9, %10, %cst_8 {dimension_numbers = #tpu.dot_dimension_numbers<[1], [0], [0], [1], [0, 0, 1, 1], [], []>} : vector<8x128xbf16>, vector<128x128xbf16>, vector<8x128xf32> -> vector<8x128xf32>
    %c0_9 = arith.constant 0 : index
    %c0_10 = arith.constant 0 : index
    %12 = vector.load %arg5[%c0_9, %c0_10] : memref<1x128xf32, #tpu.memory_space<vmem>>, vector<1x128xf32>
    %13 = vector.broadcast %12 : vector<1x128xf32> to vector<8x128xf32>
    %14 = arith.addf %11, %13 : vector<8x128xf32>
    %cst_11 = arith.constant 0.000000e+00 : f32
    %15 = vector.broadcast %cst_11 : f32 to vector<8x128xf32>
    %16 = arith.maximumf %14, %15 : vector<8x128xf32>
    %17 = arith.truncf %16 : vector<8x128xf32> to vector<8x128xbf16>
    %c0_12 = arith.constant 0 : index
    %c0_13 = arith.constant 0 : index
    %18 = vector.load %arg6[%c0_12, %c0_13] : memref<128x128xbf16, #tpu.memory_space<vmem>>, vector<128x128xbf16>
    %cst_14 = arith.constant dense<0.000000e+00> : vector<8x128xf32>
    %19 = tpu.matmul %17, %18, %cst_14 {dimension_numbers = #tpu.dot_dimension_numbers<[1], [0], [0], [1], [0, 0, 1, 1], [], []>} : vector<8x128xbf16>, vector<128x128xbf16>, vector<8x128xf32> -> vector<8x128xf32>
    %c0_15 = arith.constant 0 : index
    %c0_16 = arith.constant 0 : index
    %20 = vector.load %arg7[%c0_15, %c0_16] : memref<1x128xf32, #tpu.memory_space<vmem>>, vector<1x128xf32>
    %21 = vector.broadcast %20 : vector<1x128xf32> to vector<8x128xf32>
    %22 = arith.addf %19, %21 : vector<8x128xf32>
    %cst_17 = arith.constant dense<0xFF800000> : vector<8xf32>
    %23 = vector.multi_reduction <maximumf>, %22, %cst_17 [1] : vector<8x128xf32> to vector<8xf32>
    %24 = vector.shape_cast %23 : vector<8xf32> to vector<8x1xf32>
    %25 = vector.broadcast %24 : vector<8x1xf32> to vector<8x128xf32>
    %26 = arith.subf %22, %25 : vector<8x128xf32>
    %27 = math.exp %26 : vector<8x128xf32>
    %cst_18 = arith.constant dense<0.000000e+00> : vector<8xf32>
    %28 = vector.multi_reduction <add>, %27, %cst_18 [1] : vector<8x128xf32> to vector<8xf32>
    %29 = vector.shape_cast %28 : vector<8xf32> to vector<8x1xf32>
    %30 = math.log %29 : vector<8x1xf32>
    %31 = vector.broadcast %30 : vector<8x1xf32> to vector<8x128xf32>
    %32 = arith.subf %26, %31 : vector<8x128xf32>
    %33 = vector.extract_strided_slice %32 {offsets = [0, 0], sizes = [8, 16], strides = [1, 1]} : vector<8x128xf32> to vector<8x16xf32>
    %c0_19 = arith.constant 0 : index
    %c0_20 = arith.constant 0 : index
    %34 = vector.load %arg8[%c0_19, %c0_20] : memref<8x16xf32, #tpu.memory_space<vmem>>, vector<8x16xf32>
    tpu.vector_store %arg8[%c0_19, %c0_20], %33 {strides = array<i32>} : memref<8x16xf32, #tpu.memory_space<vmem>>, vector<8x16xf32>,
    return
  }
  func.func @transform_0(%arg0: i32) -> (i32, i32) {
    %c0_i32 = arith.constant 0 : i32
    %c0_i32_0 = arith.constant 0 : i32
    return %arg0, %c0_i32 : i32, i32
  }
  func.func @transform_1(%arg0: i32) -> (i32, i32) {
    %c0_i32 = arith.constant 0 : i32
    %c0_i32_0 = arith.constant 0 : i32
    %c0_i32_1 = arith.constant 0 : i32
    return %c0_i32, %c0_i32_0 : i32, i32
  }
  func.func @transform_2(%arg0: i32) -> (i32, i32) {
    %c0_i32 = arith.constant 0 : i32
    %c0_i32_0 = arith.constant 0 : i32
    %c0_i32_1 = arith.constant 0 : i32
    return %c0_i32, %c0_i32_0 : i32, i32
  }
  func.func @transform_3(%arg0: i32) -> (i32, i32) {
    %c0_i32 = arith.constant 0 : i32
    %c0_i32_0 = arith.constant 0 : i32
    %c0_i32_1 = arith.constant 0 : i32
    return %c0_i32, %c0_i32_0 : i32, i32
  }
  func.func @transform_4(%arg0: i32) -> (i32, i32) {
    %c0_i32 = arith.constant 0 : i32
    %c0_i32_0 = arith.constant 0 : i32
    %c0_i32_1 = arith.constant 0 : i32
    return %c0_i32, %c0_i32_0 : i32, i32
  }
  func.func @transform_5(%arg0: i32) -> (i32, i32) {
    %c0_i32 = arith.constant 0 : i32
    %c0_i32_0 = arith.constant 0 : i32
    %c0_i32_1 = arith.constant 0 : i32
    return %c0_i32, %c0_i32_0 : i32, i32
  }
  func.func @transform_6(%arg0: i32) -> (i32, i32) {
    %c0_i32 = arith.constant 0 : i32
    %c0_i32_0 = arith.constant 0 : i32
    %c0_i32_1 = arith.constant 0 : i32
    return %c0_i32, %c0_i32_0 : i32, i32
  }
  func.func @transform_7(%arg0: i32) -> (i32, i32) {
    %c0_i32 = arith.constant 0 : i32
    %c0_i32_0 = arith.constant 0 : i32
    return %arg0, %c0_i32 : i32, i32
  }
}

</mosaic_0001>

<bundles_post_ra>
// kernel: tpu_custom_call.1
= control target key start
LH: loop header
LB: loop body
LE: loop exit
PB: predicated region body
PF: predicated region fallthrough
CT: control target
= control target key end

     0   :  { %12 = vsyncpa [#allocation3], 0  ;;  %s629_s0 = inlined_call_operand.hbm [shape: f32[8,32], index: 0, kind: input, shape index: {}]   ;;  %s630_s1 = inlined_call_operand.hbm [shape: bf16[32,128], index: 1, kind: input, shape index: {}]   ;;  %s631_s2 = inlined_call_operand.vmem [shape: f32[1,128], index: 2, kind: input, shape index: {}]   ;;  %s632_s3 = inlined_call_operand.hbm [shape: bf16[128,128], index: 3, kind: input, shape index: {}]   ;;  %s633_s4 = inlined_call_operand.vmem [shape: f32[1,128], index: 4, kind: input, shape index: {}]   ;;  %s634_s5 = inlined_call_operand.hbm [shape: bf16[128,128], index: 5, kind: input, shape index: {}]   ;;  %s635_s6 = inlined_call_operand.vmem [shape: f32[1,128], index: 6, kind: input, shape index: {}]   ;;  %s636_s7 = inlined_call_operand.hbm [shape: f32[8,16], index: 7, kind: output, shape index: {}]  }
   0x1   :  { %13 = vsyncpa [#allocation6], 0 }
   0x2   :  { %14 = vsyncpa [#allocation9], 0  ;;  %s31_s26 = sshll.u32 %s630_s1, 4  ;;  %s32_s26 = int_to_ptr.hbm [resolvable:$true] %s31_s26 }
   0x3   :  { %15 = vsyncpa [#allocation4], 0  ;;  %s558_s27 = smov [#allocation5]   ;;  %s21_s8 = sshll.u32 %s629_s0, 4  ;;  %s22_s8 = int_to_ptr.hbm [resolvable:$true] %s21_s8 }
   0x4   :  { %s33_s28 = sshll.u32 %s558_s27, 4  ;;  %s559_s9 = smov 64   ;;  %s34_s28 = int_to_ptr.vmem [resolvable:$true] %s33_s28 }
   0x5   :  { %s560_s10 = smov 4   ;;  %s561_s11 = smov [#allocation2]  }
   0x6   :  { %39 = dma.hbm_to_vmem [thread:$0]  %s32_s26, 256, %s34_s28, [#allocation6], %s559_s9, %s559_s9, %s560_s10  }
   0x7   :  { %s23_s12 = sshll.u32 %s561_s11, 4  ;;  %s46_s15 = sshll.u32 %s632_s3, 4  ;;  %s24_s12 = int_to_ptr.vmem [resolvable:$true] %s23_s12  ;;  %s47_s15 = int_to_ptr.hbm [resolvable:$true] %s46_s15 }
   0x8   :  { %26 = dma.hbm_to_vmem [thread:$0]  %s22_s8, 128, %s24_s12, [#allocation3]  }
   0x9   :  { %s61_s17 = sshll.u32 %s634_s5, 4  ;;  %s562_s18 = smov [#allocation7]   ;;  %s62_s17 = int_to_ptr.hbm [resolvable:$true] %s61_s17 }
   0xa   :  { %s48_s19 = sshll.u32 %s562_s18, 4  ;;  %s563_s0 = smov [#allocation8]   ;;  %s49_s19 = int_to_ptr.vmem [resolvable:$true] %s48_s19 }
   0xb   :  { %54 = dma.hbm_to_vmem [thread:$0]  %s47_s15, 1024, %s49_s19, [#allocation6], %s559_s9, %s559_s9, %s560_s10  }
   0xc   :  { %s63_s20 = sshll.u32 %s563_s0, 4  ;;  %s64_s20 = int_to_ptr.vmem [resolvable:$true] %s63_s20 }
   0xd   :  { %69 = dma.hbm_to_vmem [thread:$0]  %s62_s17, 1024, %s64_s20, [#allocation9], %s559_s9, %s559_s9, %s560_s10  }
   0xe   :  { %550 = dma.done.wait [#allocation3], 128  }
   0xf   :  { %551 = vsyncadd [#allocation3], 4294967168 }
  0x10   :  { %552 = dma.done.wait [#allocation6], 1280  }
  0x11   :  { %553 = vsyncadd [#allocation6], 4294966016 }
  0x12   :  { %554 = dma.done.wait [#allocation9], 1024  }
  0x13   :  { %555 = vsyncadd [#allocation9], 4294966272  ;;  %v399_v0 = vld [vmem:[#allocation5 + $0x8] sm:$0xff]  ;;  %v398_v2 = vld [vmem:[#allocation5] sm:$0xff]  ;;  %vm111_vm0 = vcmask 261120   ;;  %s313_s27 = sshll.u32 %s636_s7, 4  ;;  %s314_s27 = int_to_ptr.hbm [resolvable:$true] %s313_s27 }
  0x14   :  { %v407_v1 = vld [vmem:[#allocation7 + $0x38] sm:$0xff]  ;;  %121 = vmatpush.bf16.msra.mxu0 %v399_v0  ;;  %v89_v3 = vld [vmem:[#allocation2] sm:$0xff]  ;;  %v406_v4 = vld [vmem:[#allocation7 + $0x30] sm:$0xff]  ;;  %vm304_vm1 = vcmask 130048  }
  0x15   :  { %198 = vmatpush.bf16.msra.mxu1 %v407_v1  ;;  %v90_v5 = vpack.c.bf16 %v89_v3, %v89_v3  ;;  %v405_v6 = vld [vmem:[#allocation7 + $0x28] sm:$0xff]  ;;  %v404_v7 = vld [vmem:[#allocation7 + $0x20] sm:$0xff]  ;;  %v403_v8 = vld [vmem:[#allocation7 + $0x18] sm:$0xff] }
  0x16   :  { %v402_v9 = vld [vmem:[#allocation7 + $0x10] sm:$0xff]  ;;  %v401_v10 = vld [vmem:[#allocation7 + $0x8] sm:$0xff]  ;;  %v400_v11 = vld [vmem:[#allocation7] sm:$0xff] }
  0x17   :  { %v415_v12 = vld [vmem:[#allocation8 + $0x38] sm:$0xff]  ;;  %v414_v13 = vld [vmem:[#allocation8 + $0x30] sm:$0xff]  ;;  %v413_v14 = vld [vmem:[#allocation8 + $0x28] sm:$0xff] }
  0x18   :  { %122 = vmatpush.bf16.msra.mxu0 %v398_v2  ;;  %281 = vmatpush.bf16.msra.mxu2 %v415_v12  ;;  %v412_v15 = vld [vmem:[#allocation8 + $0x20] sm:$0xff]  ;;  %v411_v16 = vld [vmem:[#allocation8 + $0x18] sm:$0xff]  ;;  %v410_v17 = vld [vmem:[#allocation8 + $0x10] sm:$0xff] }
  0x19   :  { %199 = vmatpush.bf16.msra.mxu1 %v406_v4  ;;  %v423_v18 = vld [vmem:[%s631_s2] ss:$0 sm:$0xff]  ;;  %v408_v25 = vld [vmem:[#allocation8] sm:$0xff] }
  0x1a   :  { %v409_v24 = vld [vmem:[#allocation8 + $0x8] sm:$0xff] }
  0x1b   :  { %333 = vmatmul.msk.bf16.vlgmr.msra.gmra.mxu0 %vm111_vm0, %v90_v5  ;;  %v424_v26 = vld [vmem:[%s633_s4] ss:$0 sm:$0xff]  ;;  %s564_s4 = smov [#allocation10]  }
  0x1c   :  { %282 = vmatpush.bf16.msra.mxu2 %v414_v13  ;;  %v425_v32 = vld [vmem:[%s635_s6] ss:$0 sm:$0xff]  ;;  %s311_s24 = sshll.u32 %s564_s4, 4  ;;  %s312_s24 = int_to_ptr.vmem [resolvable:$true] %s311_s24 }
  0x1d   :  { %200 = vmatpush.bf16.msra.mxu1 %v405_v6 }
  0x20   :  { %283 = vmatpush.bf16.msra.mxu2 %v413_v14 }
  0x21   :  { %201 = vmatpush.bf16.msra.mxu1 %v404_v7 }
  0x24   :  { %284 = vmatpush.bf16.msra.mxu2 %v412_v15 }
  0x25   :  { %202 = vmatpush.bf16.msra.mxu1 %v403_v8 }
  0x28   :  { %285 = vmatpush.bf16.msra.mxu2 %v411_v16 }
  0x29   :  { %203 = vmatpush.bf16.msra.mxu1 %v402_v9 }
  0x2c   :  { %286 = vmatpush.bf16.msra.mxu2 %v410_v17 }
  0x2d   :  { %204 = vmatpush.bf16.msra.mxu1 %v401_v10 }
  0x30   :  { %287 = vmatpush.bf16.msra.mxu2 %v409_v24 }
  0x31   :  { %205 = vmatpush.bf16.msra.mxu1 %v400_v11 }
  0x34   :  { %288 = vmatpush.bf16.msra.mxu2 %v408_v25 }
  0x98   :  { %v124_v19 = vpop.f32.mrf.mxu0 }
  0x99   :  { %v125_v20 = vadd.f32 %v423_v18, %v124_v19 }
  0x9b   :  { %v128_v21 = vmax.f32 %v125_v20, 0.0 }
  0x9d   :  { %v129_v22 = vpack.c.bf16 %v128_v21, %v128_v21 }
  0x9f   :  { %206 = vmatmul.bf16.vlgmr.msra.gmra.mxu1 %v129_v22 }
  0xa0   :  { %v126_v23 = vpop.f32.mrf.mxu0 }
 0x11c   :  { %v207_v27 = vpop.f32.mrf.mxu1 }
 0x11d   :  { %v208_v28 = vadd.f32 %v424_v26, %v207_v27 }
 0x11f   :  { %v211_v29 = vmax.f32 %v208_v28, 0.0 }
 0x121   :  { %v212_v30 = vpack.c.bf16 %v211_v29, %v211_v29 }
 0x123   :  { %289 = vmatmul.bf16.vlgmr.msra.gmra.mxu2 %v212_v30 }
 0x124   :  { %v209_v31 = vpop.f32.mrf.mxu1 }
 0x1a6   :  { %v290_v33 = vpop.f32.mrf.mxu2 }
 0x1a7   :  { %v291_v34 = vadd.f32 %v425_v32, %v290_v33 }
 0x1a9   :  { %294 = vmax.xlane.f32.xlu0 %v291_v34 }
 0x1ae   :  { %v292_v35 = vpop.f32.mrf.mxu2 }
 0x21c   :  { %v295_v36 = vpop.xlane.xlu0 %294 }
 0x21d   :  { %v296_v37 = vsub.f32 %v291_v34, %v295_v36 }
 0x21f   :  { %v297_v38 = vmul.f32 1.442695, %v296_v37 }
 0x221   :  { %426 = vpow2.f32 %v297_v38 }
 0x227   :  { %v427_v39 = vpop.eup %426 }
 0x228   :  { %299 = vadd.xlane.f32.xlu0 %v427_v39 }
 0x29b   :  { %v300_v40 = vpop.xlane.xlu0 %299 }
 0x29c   :  { %428 = vlog2.f32 %v300_v40 }
 0x2a2   :  { %v429_v41 = vpop.eup %428 }
 0x2a3   :  { %v302_v42 = vmul.f32 0.6931472, %v429_v41 }
 0x2a5   :  { %v303_v43 = vsub.f32 %v296_v37, %v302_v42 }
 0x2a7   :  { %305 = vst.msk [vmem:[#allocation10] sm:$0xff] %vm304_vm1, %v303_v43 }
 0x2a8   :  { %316 = dma.vmem_to_hbm [thread:$0]  %s312_s24, 128, %s314_s27, [#allocation4]  }
 0x2a9   :  { %556 = dma.done.wait [#allocation4], 128  }
 0x2aa   :  { %557 = vsyncadd [#allocation4], 4294967168 }
 0x2ab   :  { %321 = vsyncpa [#allocation3], 1 }
 0x2ac   :  { %322 = vsyncpa [#allocation6], 1 }
 0x2ad   :  { %323 = vsyncpa [#allocation9], 1 }
 0x2ae   :  { %324 = vsyncpa [#allocation4], 1 }

</bundles_post_ra>
